<compile_context>
chip_gen: v7x
topology: tpu7x:2x2x1
jax: 0.10.0
libtpu: 0.0.40
codegen_flags: <defaults>
</compile_context>

<pallas_src>
import functools

import jax
import jax.numpy as jnp
from jax.experimental import pallas as pl
from jax.experimental.pallas import tpu as pltpu


# ----------------------------- Pallas kernel --------------------------------

def _mlp_kernel(*refs, n_layers, add_bias, nonlinearity):
    """Fused MLP: x -> L1 -> nl -> L2 -> nl -> ... -> L_n (no nl after last).

    refs = (x_ref, w1, [b1], w2, [b2], ..., wN, [bN], o_ref)
    All refs are full VMEM blocks; the whole parameter set is tiny (<64 KiB),
    so no K/N tiling or reduction grid is used (pure serial overhead here).
    """
    x_ref = refs[0]
    o_ref = refs[-1]
    param_refs = refs[1:-1]

    h = x_ref[...]
    idx = 0
    for i in range(n_layers):
        w = param_refs[idx][...]
        idx += 1
        acc = jnp.dot(h, w, preferred_element_type=jnp.float32)   # MXU
        if add_bias:
            acc = acc + param_refs[idx][...]                       # (1,N) bcast
            idx += 1
        if (nonlinearity == "tanh") and (i + 1 < n_layers):
            acc = jnp.tanh(acc)                                    # EUP
        h = acc
    o_ref[...] = h.astype(o_ref.dtype)


# ------------------------------ wrapper --------------------------------------

def _round_up(x, m):
    return ((x + m - 1) // m) * m


def _num_tensorcores():
    """Best-effort TensorCore-per-device count (v7x: 2, older gens: 1)."""
    try:
        d = jax.devices()[0]
        n = getattr(d, "num_cores", None)
        if isinstance(n, int) and n > 0:
            return n
        kind = str(getattr(d, "device_kind", "")).lower()
        if "v7" in kind:
            return 2
    except Exception:
        pass
    return 1


def actor_forward_fused(states, weights, biases, *, add_bias, nonlinearity,
                        num_tc=None, max_block_bytes=2 << 20):
    """Single fused Pallas call for the whole ActorNetwork forward pass.

    states:     (B, Ls[0]) f32
    weights[i]: (Ls[i], Ls[i+1]) f32  (PyTorch nn.Linear.weight transposed)
    biases[i]:  (1, Ls[i+1]) f32 or None
    """
    n_layers = len(weights)
    B, n_in = states.shape
    n_out = weights[-1].shape[1]

    params = []
    for i in range(n_layers):
        params.append(weights[i])
        if add_bias:
            params.append(biases[i])

    kernel = functools.partial(_mlp_kernel, n_layers=n_layers,
                               add_bias=add_bias, nonlinearity=nonlinearity)
    out_shape = jax.ShapeDtypeStruct((B, n_out), states.dtype)

    # Advisory cost hint so XLA schedules the tiny custom call well.
    flops = 2 * B * sum(int(w.shape[0]) * int(w.shape[1]) for w in weights)
    transcendentals = (B * sum(int(w.shape[1]) for w in weights[:-1])
                       if nonlinearity == "tanh" else 0)
    param_bytes = sum(int(p.size) * p.dtype.itemsize for p in params)
    bytes_accessed = B * (n_in + n_out) * states.dtype.itemsize + param_bytes
    cost = pl.CostEstimate(flops=flops, transcendentals=transcendentals,
                           bytes_accessed=bytes_accessed)

    if num_tc is None:
        num_tc = _num_tensorcores()

    # Batch-tile sizing: one tile per TensorCore when >1 TC, otherwise the
    # whole batch, bounded by a small per-block VMEM budget for x + out.
    row_bytes = (n_in + n_out) * states.dtype.itemsize
    max_rows = max(8, (max_block_bytes // row_bytes) // 8 * 8)
    target = pl.cdiv(B, num_tc) if num_tc > 1 else B
    tile_b = _round_up(max(1, min(target, max_rows)), 8)
    n_blocks = pl.cdiv(B, tile_b)

    if n_blocks <= 1:
        # Grid-less: one step, whole problem VMEM resident (v5e/v6e fast path,
        # and the small-batch path on every generation).
        return pl.pallas_call(
            kernel,
            out_shape=out_shape,
            cost_estimate=cost,
        )(states, *params)

    # Gridded along batch; params use a constant index_map (block (0, 0)), so
    # they are fetched once and not re-DMA'd per step.  The last tile may be
    # partial (B % tile_b != 0): Pallas masks the out-of-bounds store and the
    # MLP is row-wise independent, so correctness is unaffected.
    def x_map(i):
        return (i, 0)

    def rep_map(i):
        return (0, 0)

    in_specs = [pl.BlockSpec((tile_b, n_in), x_map)]
    in_specs += [pl.BlockSpec(p.shape, rep_map) for p in params]

    return pl.pallas_call(
        kernel,
        out_shape=out_shape,
        grid=(n_blocks,),
        in_specs=in_specs,
        out_specs=pl.BlockSpec((tile_b, n_out), x_map),
        compiler_params=pltpu.CompilerParams(
            dimension_semantics=("parallel",)),
        cost_estimate=cost,
    )(states, *params)


# --------------------------- params / reference ------------------------------

def init_actor_params(key, Ls, add_bias):
    """Deterministic parameter init (PyTorch-Linear-style uniform bounds)."""
    weights, biases = [], []
    for (fan_in, fan_out) in zip(Ls[:-1], Ls[1:]):
        key, kw, kb = jax.random.split(key, 3)
        bound = 1.0 / jnp.sqrt(jnp.float32(fan_in))
        # stored directly in kernel layout (in, out)
        w = jax.random.uniform(kw, (fan_in, fan_out), jnp.float32, -bound, bound)
        weights.append(w)
        if add_bias:
            b = jax.random.uniform(kb, (1, fan_out), jnp.float32, -bound, bound)
            biases.append(b)
        else:
            biases.append(None)
    return weights, biases


def actor_forward_ref(states, weights, biases, *, add_bias, nonlinearity):
    """Pure-JAX reference mirroring ActorNetwork.forward."""
    n_layers = len(weights)
    out = states
    for i, w in enumerate(weights):
        out = jnp.dot(out, w, preferred_element_type=jnp.float32)
        if add_bias:
            out = out + biases[i]
        if (nonlinearity == "tanh") and (i + 1 < n_layers):
            out = jnp.tanh(out)
    return out


# ---------------------------------- main ------------------------------------

if __name__ == "__main__":
    # ActorNetwork(Ls=[32, 64, 64, 8], add_bias=True, nonlinearity=torch.tanh)
    Ls = [32, 64, 64, 8]
    add_bias = True
    nonlinearity = "tanh"   # None would mean the module's default Identity

    key = jax.random.PRNGKey(0)
    key, k_small, k_mid, k_big = jax.random.split(key, 4)
    weights, biases = init_actor_params(key, Ls, add_bias)

    # --- small batch: grid-less fused kernel (all generations) ---
    batch = 8
    states = jax.random.normal(k_small, (batch, Ls[0]), jnp.float32)
    out = actor_forward_fused(states, weights, biases,
                              add_bias=add_bias, nonlinearity=nonlinearity)
    out = jax.block_until_ready(out)
    ref = actor_forward_ref(states, weights, biases,
                            add_bias=add_bias, nonlinearity=nonlinearity)
    assert out.shape == (batch, Ls[-1])
    assert jnp.allclose(out, ref, atol=1e-5, rtol=1e-5), "small-batch mismatch"

    # --- medium batch, auto device policy (grid-less on 1-TC parts) ---
    batch_mid = 512
    states_mid = jax.random.normal(k_mid, (batch_mid, Ls[0]), jnp.float32)
    out_mid = actor_forward_fused(states_mid, weights, biases,
                                  add_bias=add_bias, nonlinearity=nonlinearity)
    out_mid = jax.block_until_ready(out_mid)
    ref_mid = actor_forward_ref(states_mid, weights, biases,
                                add_bias=add_bias, nonlinearity=nonlinearity)
    assert out_mid.shape == (batch_mid, Ls[-1])
    assert jnp.allclose(out_mid, ref_mid, atol=1e-5, rtol=1e-5), "mid-batch mismatch"

    # --- non-divisible batch with forced 2-TC tiling (v7x-style path,
    #     exercises the cdiv grid + masked partial last tile) ---
    batch_big = 500
    states_big = jax.random.normal(k_big, (batch_big, Ls[0]), jnp.float32)
    out_big = actor_forward_fused(states_big, weights, biases,
                                  add_bias=add_bias, nonlinearity=nonlinearity,
                                  num_tc=2)
    out_big = jax.block_until_ready(out_big)
    ref_big = actor_forward_ref(states_big, weights, biases,
                                add_bias=add_bias, nonlinearity=nonlinearity)
    assert out_big.shape == (batch_big, Ls[-1])
    assert jnp.allclose(out_big, ref_big, atol=1e-5, rtol=1e-5), "big-batch mismatch"

    print("KERNEL_OK")
</pallas_src>

<mosaic_0001>
module attributes {stable_mosaic.version = 11 : i64} {
  func.func @_mlp_kernel(%arg0: memref<8x32xf32, #tpu.memory_space<vmem>>, %arg1: memref<32x64xf32, #tpu.memory_space<vmem>>, %arg2: memref<1x64xf32, #tpu.memory_space<vmem>>, %arg3: memref<64x64xf32, #tpu.memory_space<vmem>>, %arg4: memref<1x64xf32, #tpu.memory_space<vmem>>, %arg5: memref<64x8xf32, #tpu.memory_space<vmem>>, %arg6: memref<1x8xf32, #tpu.memory_space<vmem>>, %arg7: memref<8x8xf32, #tpu.memory_space<vmem>>) attributes {dimension_semantics = [], scalar_prefetch = 0 : i64, scratch_operands = 0 : i64, tpu.core_type = #tpu.core_type<tc>} {
    %c0 = arith.constant 0 : index
    %c0_0 = arith.constant 0 : index
    %0 = vector.load %arg0[%c0, %c0_0] : memref<8x32xf32, #tpu.memory_space<vmem>>, vector<8x32xf32>
    %c0_1 = arith.constant 0 : index
    %c0_2 = arith.constant 0 : index
    %1 = vector.load %arg1[%c0_1, %c0_2] : memref<32x64xf32, #tpu.memory_space<vmem>>, vector<32x64xf32>
    %cst = arith.constant dense<0.000000e+00> : vector<8x64xf32>
    %2 = tpu.matmul %0, %1, %cst {dimension_numbers = #tpu.dot_dimension_numbers<[1], [0], [0], [1], [0, 0, 1, 1], [], []>} : vector<8x32xf32>, vector<32x64xf32>, vector<8x64xf32> -> vector<8x64xf32>
    %c0_3 = arith.constant 0 : index
    %c0_4 = arith.constant 0 : index
    %3 = vector.load %arg2[%c0_3, %c0_4] : memref<1x64xf32, #tpu.memory_space<vmem>>, vector<1x64xf32>
    %4 = vector.broadcast %3 : vector<1x64xf32> to vector<8x64xf32>
    %5 = arith.addf %2, %4 : vector<8x64xf32>
    %6 = math.tanh %5 : vector<8x64xf32>
    %c0_5 = arith.constant 0 : index
    %c0_6 = arith.constant 0 : index
    %7 = vector.load %arg3[%c0_5, %c0_6] : memref<64x64xf32, #tpu.memory_space<vmem>>, vector<64x64xf32>
    %cst_7 = arith.constant dense<0.000000e+00> : vector<8x64xf32>
    %8 = tpu.matmul %6, %7, %cst_7 {dimension_numbers = #tpu.dot_dimension_numbers<[1], [0], [0], [1], [0, 0, 1, 1], [], []>} : vector<8x64xf32>, vector<64x64xf32>, vector<8x64xf32> -> vector<8x64xf32>
    %c0_8 = arith.constant 0 : index
    %c0_9 = arith.constant 0 : index
    %9 = vector.load %arg4[%c0_8, %c0_9] : memref<1x64xf32, #tpu.memory_space<vmem>>, vector<1x64xf32>
    %10 = vector.broadcast %9 : vector<1x64xf32> to vector<8x64xf32>
    %11 = arith.addf %8, %10 : vector<8x64xf32>
    %12 = math.tanh %11 : vector<8x64xf32>
    %c0_10 = arith.constant 0 : index
    %c0_11 = arith.constant 0 : index
    %13 = vector.load %arg5[%c0_10, %c0_11] : memref<64x8xf32, #tpu.memory_space<vmem>>, vector<64x8xf32>
    %cst_12 = arith.constant dense<0.000000e+00> : vector<8x8xf32>
    %14 = tpu.matmul %12, %13, %cst_12 {dimension_numbers = #tpu.dot_dimension_numbers<[1], [0], [0], [1], [0, 0, 1, 1], [], []>} : vector<8x64xf32>, vector<64x8xf32>, vector<8x8xf32> -> vector<8x8xf32>
    %c0_13 = arith.constant 0 : index
    %c0_14 = arith.constant 0 : index
    %15 = vector.load %arg6[%c0_13, %c0_14] : memref<1x8xf32, #tpu.memory_space<vmem>>, vector<1x8xf32>
    %16 = vector.broadcast %15 : vector<1x8xf32> to vector<8x8xf32>
    %17 = arith.addf %14, %16 : vector<8x8xf32>
    %c0_15 = arith.constant 0 : index
    %c0_16 = arith.constant 0 : index
    %18 = vector.load %arg7[%c0_15, %c0_16] : memref<8x8xf32, #tpu.memory_space<vmem>>, vector<8x8xf32>
    tpu.vector_store %arg7[%c0_15, %c0_16], %17 {strides = array<i32>} : memref<8x8xf32, #tpu.memory_space<vmem>>, vector<8x8xf32>,
    return
  }
}

</mosaic_0001>

<bundles_post_ra>
// kernel: tpu_custom_call.1
= control target key start
LH: loop header
LB: loop body
LE: loop exit
PB: predicated region body
PF: predicated region fallthrough
CT: control target
= control target key end

     0   :  { %12 = vsyncpa [#allocation3], 0  ;;  %s636_s0 = inlined_call_operand.vmem [shape: f32[8,32], index: 0, kind: input, shape index: {}]   ;;  %s637_s1 = inlined_call_operand.hbm [shape: f32[32,64], index: 1, kind: input, shape index: {}]   ;;  %s638_s2 = inlined_call_operand.vmem [shape: f32[1,64], index: 2, kind: input, shape index: {}]   ;;  %s639_s3 = inlined_call_operand.vmem [shape: f32[64,64], index: 3, kind: input, shape index: {}]   ;;  %s640_s4 = inlined_call_operand.vmem [shape: f32[1,64], index: 4, kind: input, shape index: {}]   ;;  %s641_s5 = inlined_call_operand.vmem [shape: f32[64,8], index: 5, kind: input, shape index: {}]   ;;  %s642_s6 = inlined_call_operand.vmem [shape: f32[1,8], index: 6, kind: input, shape index: {}]   ;;  %s643_s7 = inlined_call_operand.hbm [shape: f32[8,8], index: 7, kind: output, shape index: {}]  }
   0x1   :  { %13 = vsyncpa [#allocation4], 0  ;;  %s490_s24 = smov [#allocation2]   ;;  %s442_s28 = scalar_lea.hbm %s637_s1, 512 }
   0x2   :  { %s21_s25 = sshll.u32 %s490_s24, 4  ;;  %p443_p0 = scmp.ne.s32.totalorder %s637_s1, %s442_s28  ;;  %s22_s25 = int_to_ptr.vmem [resolvable:$true] %s21_s25 }
   0x3   :  { %p446_p1 = scmp.lt.u32.totalorder %s442_s28, %s637_s1 }
   0x5   :  { %p448_p2 = pnand %p446_p1, %p443_p0 }
   0x7   :  { %451 = shalt.err (!%p448_p2)
}
   0x8   :  { %s452_s10 = scalar_lea.vmem %s22_s25, 512  ;;  %p457_p4 = scmp.lt.s32.totalorder %s22_s25, %s22_s25 }
   0x9   :  { %p453_p3 = scmp.ne.s32.totalorder %s22_s25, %s452_s10  ;;  %p458_p5 = scmp.lt.s32.totalorder %s452_s10, %s452_s10 }
   0xb   :  { %p459_p6 = por %p458_p5, %p457_p4 }
   0xd   :  { %p460_p7 = pnand %p459_p6, %p453_p3 }
   0xf   :  { %463 = shalt.err (!%p460_p7)
}
  0x10   :  { %s491_s11 = smov 128   ;;  %s492_s12 = smov 8  }
  0x11   :  { %27 = dma.hbm_to_vmem [thread:$0]  %s637_s1, 512, %s22_s25, [#allocation3], %s491_s11, %s491_s11, %s492_s12  }
  0x12   :  { %486 = dma.done.wait [#allocation3], 512  }
  0x13   :  { %487 = vsyncadd [#allocation3], 4294966784  ;;  %v493_v0 = vmov 0.0|0.0   ;;  %vm494_vm0 = vmmov 0   ;;  %v495_v1 = vmov 0.0   ;;  %v42_v2 = vld [vmem:[#allocation2] sm:$0xff] }
  0x14   :  { %401 = vmatprep.subr.bf16.mxu0 %v493_v0  ;;  %360 = vmatprep.mubr.msk.f32.mxu0 %vm494_vm0, %v495_v1  ;;  %v43_v3 = vld [vmem:[#allocation2 + $0x8] sm:$0xff]  ;;  %v44_v4 = vld [vmem:[#allocation2 + $0x10] sm:$0xff]  ;;  %v45_v6 = vld [vmem:[#allocation2 + $0x18] sm:$0xff]  ;;  %vm53_vm1 = vcmask 261120   ;;  %vm143_vm2 = vcmask 523264   ;;  %vm306_vm3 = vcmask 64512  }
  0x15   :  { %407 = vmatprep.subr.bf16.mxu1 %v493_v0  ;;  %379 = vmatprep.mubr.msk.f32.mxu1 %vm494_vm0, %v495_v1  ;;  %v402_v5 = vpack.c.bf16 %v43_v3, %v42_v2  ;;  %v128_v7 = vld [vmem:[%s639_s3] sm:$0xff]  ;;  %v129_v8 = vld [vmem:[%s639_s3 + $0x8] sm:$0xff]  ;;  %v405_v9 = vpack.c.bf16 %v45_v6, %v44_v4  ;;  %v130_v12 = vld [vmem:[%s639_s3 + $0x10] sm:$0xff] }
  0x16   :  { %v408_v10 = vpack.c.bf16 %v129_v8, %v128_v7  ;;  %v41_v11 = vld [vmem:[%s636_s0] sm:$0xff]  ;;  %v131_v13 = vld [vmem:[%s639_s3 + $0x18] sm:$0xff]  ;;  %v133_v16 = vld [vmem:[%s639_s3 + $0x28] sm:$0xff] }
  0x17   :  { %403 = vmatpush3.bf16.msra.mxu0 %v402_v5  ;;  %v411_v14 = vpack.c.bf16 %v131_v13, %v130_v12  ;;  %v132_v15 = vld [vmem:[%s639_s3 + $0x20] sm:$0xff]  ;;  %v134_v18 = vld [vmem:[%s639_s3 + $0x30] sm:$0xff]  ;;  %v135_v19 = vld [vmem:[%s639_s3 + $0x38] sm:$0xff] }
  0x18   :  { %404 = vmatprep.subr.bf16.mxu0 %v493_v0  ;;  %409 = vmatpush3.bf16.msra.mxu1 %v408_v10  ;;  %v414_v17 = vpack.c.bf16 %v133_v16, %v132_v15  ;;  %v417_v20 = vpack.c.bf16 %v135_v19, %v134_v18  ;;  %v218_v21 = vld [vmem:[%s641_s5] sm:$0xff]  ;;  %v219_v22 = vld [vmem:[%s641_s5 + $0x8] sm:$0xff]  ;;  %v220_v29 = vld [vmem:[%s641_s5 + $0x10] sm:$0xff] }
  0x19   :  { %410 = vmatprep.subr.bf16.mxu1 %v493_v0  ;;  %v420_v23 = vpack.c.bf16 %v219_v22, %v218_v21  ;;  %v323_v24 = vld [vmem:[%s638_s2] ss:$0 sm:$0xff]  ;;  %v221_v30 = vld [vmem:[%s641_s5 + $0x18] sm:$0xff]  ;;  %v223_v33 = vld [vmem:[%s641_s5 + $0x28] sm:$0xff] }
  0x1a   :  { %v423_v31 = vpack.c.bf16 %v221_v30, %v220_v29  ;;  %v222_v32 = vld [vmem:[%s641_s5 + $0x20] sm:$0xff]  ;;  %v224_v35 = vld [vmem:[%s641_s5 + $0x30] sm:$0xff]  ;;  %v225_v36 = vld [vmem:[%s641_s5 + $0x38] sm:$0xff]  ;;  %s496_s5 = smov [#allocation5]  }
  0x1b   :  { %406 = vmatpush3.bf16.msra.mxu0 %v405_v9  ;;  %v426_v34 = vpack.c.bf16 %v223_v33, %v222_v32  ;;  %v429_v37 = vpack.c.bf16 %v225_v36, %v224_v35  ;;  %v325_v38 = vld [vmem:[%s640_s4] ss:$0 sm:$0xff]  ;;  %s314_s26 = sshll.u32 %s496_s5, 4  ;;  %s315_s26 = int_to_ptr.vmem [resolvable:$true] %s314_s26 }
  0x1c   :  { %419 = vmatprep.subr.bf16.mxu0 %v493_v0  ;;  %412 = vmatpush3.bf16.msra.mxu1 %v411_v14  ;;  %v327_v43 = vld [vmem:[%s642_s6] ss:$0 sm:$0xff]  ;;  %s464_s4 = scalar_lea.vmem %s315_s26, 128  ;;  %p469_p9 = scmp.lt.s32.totalorder %s315_s26, %s315_s26 }
  0x1d   :  { %413 = vmatprep.subr.bf16.mxu1 %v493_v0  ;;  %p465_p8 = scmp.ne.s32.totalorder %s315_s26, %s464_s4  ;;  %p470_p10 = scmp.lt.s32.totalorder %s464_s4, %s464_s4 }
  0x1e   :  { %361 = vmatmul.mubr.msk.f32.vlgmr.msra.gmra.mrb[0].mxu0 %vm53_vm1, %v41_v11 }
  0x1f   :  { %398 = vmatprep.mubr.msk.f32.mxu0 %vm494_vm0, %v495_v1  ;;  %421 = vmatpush3.bf16.msra.mxu0 %v420_v23  ;;  %p471_p11 = por %p470_p10, %p469_p9 }
  0x20   :  { %415 = vmatpush3.bf16.msra.mxu1 %v414_v17  ;;  %422 = vmatprep.subr.bf16.mxu0 %v493_v0 }
  0x21   :  { %416 = vmatprep.subr.bf16.mxu1 %v493_v0  ;;  %p472_p12 = pnand %p471_p11, %p465_p8 }
  0x23   :  { %424 = vmatpush3.bf16.msra.mxu0 %v423_v31 }
  0x24   :  { %418 = vmatpush3.bf16.msra.mxu1 %v417_v20  ;;  %425 = vmatprep.subr.bf16.mxu0 %v493_v0 }
  0x27   :  { %427 = vmatpush3.bf16.msra.mxu0 %v426_v34 }
  0x28   :  { %428 = vmatprep.subr.bf16.mxu0 %v493_v0 }
  0x2b   :  { %430 = vmatpush3.bf16.msra.mxu0 %v429_v37 }
  0xf1   :  { %v123_v25 = vpop.f32.mrb[0].mxu0 }
  0xf2   :  { %v124_v26 = vadd.f32 %v323_v24, %v123_v25  ;;  %v362_v27 = vpop.f32.mrb[1].mxu0 }
  0xf4   :  { %438 = vtanh.f32 %v124_v26 }
  0xfe   :  { %v439_v28 = vpop.eup %438 }
  0xff   :  { %380 = vmatmul.mubr.msk.f32.vlgmr.msra.gmra.mrb[0].mxu1 %vm143_vm2, %v439_v28 }
 0x1d2   :  { %v213_v39 = vpop.f32.mrb[0].mxu1 }
 0x1d3   :  { %v214_v40 = vadd.f32 %v325_v38, %v213_v39  ;;  %v381_v41 = vpop.f32.mrb[1].mxu1 }
 0x1d5   :  { %440 = vtanh.f32 %v214_v40 }
 0x1df   :  { %v441_v42 = vpop.eup %440 }
 0x1e0   :  { %399 = vmatmul.mubr.msk.f32.vlgmr.msra.gmra.mrb[2].mxu0 %vm143_vm2, %v441_v42 }
 0x2b3   :  { %v302_v44 = vpop.f32.mrb[2].mxu0 }
 0x2b4   :  { %v303_v45 = vadd.f32 %v327_v43, %v302_v44  ;;  %v400_v46 = vpop.f32.mrb[3].mxu0 }
 0x2b6   :  { %307 = vst.msk [vmem:[#allocation5] sm:$0xff] %vm306_vm3, %v303_v45 }
 0x2b7   :  { %475 = shalt.err (!%p472_p12)
}
 0x2b8   :  { %s476_s29 = scalar_lea.hbm %s643_s7, 128 }
 0x2b9   :  { %p477_p13 = scmp.ne.s32.totalorder %s643_s7, %s476_s29  ;;  %p480_p0 = scmp.lt.u32.totalorder %s476_s29, %s643_s7 }
 0x2bb   :  { %p482_p1 = pnand %p480_p0, %p477_p13 }
 0x2bd   :  { %485 = shalt.err (!%p482_p1)
}
 0x2be   :  { %317 = dma.vmem_to_hbm [thread:$0]  %s315_s26, 128, %s643_s7, [#allocation4]  }
 0x2bf   :  { %488 = dma.done.wait [#allocation4], 128  }
 0x2c0   :  { %489 = vsyncadd [#allocation4], 4294967168 }
 0x2c1   :  { %321 = vsyncpa [#allocation3], 1 }
 0x2c2   :  { %322 = vsyncpa [#allocation4], 1 }

</bundles_post_ra>
